<compile_context>
chip_gen: v6e
topology: v6e:2x2x1
jax: 0.10.0
libtpu: 0.0.40
codegen_flags: <defaults>
</compile_context>

<pallas_src>
import jax
import jax.numpy as jnp
from jax import lax
from jax.experimental import pallas as pl
from jax.experimental.pallas import tpu as pltpu


def _round_up(x, m):
    return (x + m - 1) // m * m


def rnn_encoder_kernel(gx_ref, w_hh_ref, w_out_ref, b_out_ref,
                       probs_ref, h_out_ref, h_ref, c_ref):
    """One time-chunk grid step of the LSTM recurrence.

    gx_ref   : (Tt, Bp, 4Hp) f32   precomputed gate inputs, gate order (i,f,o,g)
    w_hh_ref : (Hp, 4Hp)     bf16  recurrent weight (reordered, zero-padded)
    w_out_ref: (Hp, C)       bf16  output_linear weight (zero-padded rows)
    b_out_ref: (1, C)        f32
    probs_ref: (Bp, C)       f32   softmax output (written on last chunk)
    h_out_ref: (Bp, Hp)      f32   final hidden state (written on last chunk)
    h_ref/c_ref: (Bp, Hp)    f32   VMEM scratch carrying LSTM state across chunks
    """
    f32 = jnp.float32
    bf16 = jnp.bfloat16
    Hp = w_hh_ref.shape[0]
    Tt = gx_ref.shape[0]
    t_chunk = pl.program_id(0)

    @pl.when(t_chunk == 0)
    def _init_state():
        h_ref[...] = jnp.zeros_like(h_ref)
        c_ref[...] = jnp.zeros_like(c_ref)

    w_hh = w_hh_ref[...]                       # (Hp, 4Hp) bf16, loaded once per chunk

    # Small static unroll inside a fori_loop: scheduler visibility without the
    # instruction bloat / vreg pressure of a full Python unroll.
    unroll = 4 if Tt % 4 == 0 else (2 if Tt % 2 == 0 else 1)

    def lstm_step(h, c, tl):
        r = jnp.dot(h.astype(bf16), w_hh, preferred_element_type=f32)   # (Bp, 4Hp)
        g = gx_ref[tl] + r
        # Gate order (i, f, o, g): one contiguous sigmoid over 3*Hp lanes,
        # one tanh over Hp lanes; all slices are whole 128-lane tiles.
        sig = jax.nn.sigmoid(g[:, 0:3 * Hp])
        g_g = jnp.tanh(g[:, 3 * Hp:4 * Hp])
        i_g = sig[:, 0:Hp]
        f_g = sig[:, Hp:2 * Hp]
        o_g = sig[:, 2 * Hp:3 * Hp]
        c = f_g * c + i_g * g_g
        h = o_g * jnp.tanh(c)
        return h, c

    def step_block(blk, carry):
        h, c = carry
        for u in range(unroll):
            h, c = lstm_step(h, c, blk * unroll + u)
        return h, c

    h, c = lax.fori_loop(0, Tt // unroll, step_block, (h_ref[...], c_ref[...]))
    h_ref[...] = h
    c_ref[...] = c

    @pl.when(t_chunk == pl.num_programs(0) - 1)
    def _finalize():
        logits = (jnp.dot(h.astype(bf16), w_out_ref[...],
                          preferred_element_type=f32) + b_out_ref[...])   # (Bp, C)
        m = jnp.max(logits, axis=-1, keepdims=True)
        e = jnp.exp(logits - m)
        probs_ref[...] = e / jnp.sum(e, axis=-1, keepdims=True)
        h_out_ref[...] = h


def _pick_time_block(T, Bp, H4p, max_block_bytes=4 << 20):
    """Largest divisor of T whose per-chunk gx slab stays under max_block_bytes."""
    best = 1
    for d in range(1, T + 1):
        if T % d == 0 and d * Bp * H4p * 4 <= max_block_bytes:
            best = d
    return best


def rnn_encoder_forward(x_idx, params, *, time_block=None):
    """embedding -> input_linear+ReLU -> LSTM -> output_linear -> softmax."""
    B, T = x_idx.shape
    E = params['w_in'].shape[0]
    H = params['w_hh'].shape[1]
    C = params['w_out'].shape[0]
    f32, bf16 = jnp.float32, jnp.bfloat16

    Hp = _round_up(H, 128)     # lane-aligned per-gate slices
    Bp = _round_up(B, 8)       # f32 sublane alignment for the state / gx rows
    H4p = 4 * Hp

    # ---- per-token gate table (all time-independent work, f32 throughout) ----
    emb = params['embedding'].astype(f32)                                  # (V, D_in)
    xe = jnp.maximum(emb @ params['w_in'].T.astype(f32) + params['b_in'], 0.0)
    gx_raw = xe @ params['w_ih'].T.astype(f32) + (params['b_ih'] + params['b_hh'])
    # PyTorch gate order (i, f, g, o) -> (i, f, o, g); pad each gate H -> Hp.
    gates = gx_raw.reshape(-1, 4, H)[:, (0, 1, 3, 2), :]
    gx_table = jnp.pad(gates, ((0, 0), (0, 0), (0, Hp - H))).reshape(-1, H4p)

    # Recurrent weight: (4H, H) -> (Hp, 4Hp), columns reordered to (i,f,o,g),
    # zero-padded rows (padded h lanes never feed back) and columns.
    w_hh = params['w_hh'].T.astype(f32).reshape(H, 4, H)[:, (0, 1, 3, 2), :]
    w_hh = jnp.pad(w_hh, ((0, Hp - H), (0, 0), (0, Hp - H))).reshape(Hp, H4p)
    w_hh_t = w_hh.astype(bf16)

    # Output weight: zero-padded rows so padded h lanes do not reach the logits.
    w_out_t = jnp.pad(params['w_out'].T.astype(f32), ((0, Hp - H), (0, 0))).astype(bf16)
    b_out2 = params['b_out'].reshape(1, C).astype(f32)

    # ---- gather the per-timestep gate rows, time-major, batch padded ----------
    idx_p = jnp.pad(x_idx.astype(jnp.int32), ((0, Bp - B), (0, 0)))        # pad with token 0
    gx_seq = jnp.transpose(gx_table[idx_p], (1, 0, 2))                     # (T, Bp, 4Hp) f32

    Tt = time_block if time_block is not None else _pick_time_block(T, Bp, H4p)
    assert T % Tt == 0, "time_block must divide the sequence length"
    nt = T // Tt

    in_specs = [
        pl.BlockSpec((Tt, Bp, H4p), lambda t: (t, 0, 0)),   # streamed gate rows
        pl.BlockSpec((Hp, H4p), lambda t: (0, 0)),          # W_hh (loop-invariant)
        pl.BlockSpec((Hp, C), lambda t: (0, 0)),            # W_out
        pl.BlockSpec((1, C), lambda t: (0, 0)),             # b_out
    ]
    out_specs = (
        pl.BlockSpec((Bp, C), lambda t: (0, 0)),
        pl.BlockSpec((Bp, Hp), lambda t: (0, 0)),
    )

    # VMEM budget: double-buffered gx slab + (double-buffered) weights +
    # state scratch + resident outputs, with headroom; stays well under 64 MiB.
    block_bytes = Tt * Bp * H4p * 4
    weight_bytes = Hp * H4p * 2 + Hp * C * 2 + C * 4
    scratch_bytes = 2 * Bp * Hp * 4
    out_bytes = Bp * (C + Hp) * 4
    vmem_limit = int(min(48 * 2**20,
                         max(4 * 2**20,
                             2 * block_bytes + 2 * weight_bytes
                             + scratch_bytes + 2 * out_bytes + (1 << 20))))

    cost = pl.CostEstimate(
        flops=int(2 * T * Bp * Hp * H4p + 2 * Bp * Hp * C),
        transcendentals=int(5 * T * Bp * Hp + Bp * C),
        bytes_accessed=int(gx_seq.size * 4 + weight_bytes + out_bytes),
    )

    probs_p, h_p = pl.pallas_call(
        rnn_encoder_kernel,
        out_shape=(jax.ShapeDtypeStruct((Bp, C), f32),
                   jax.ShapeDtypeStruct((Bp, Hp), f32)),
        grid=(nt,),
        in_specs=in_specs,
        out_specs=out_specs,
        scratch_shapes=[pltpu.VMEM((Bp, Hp), f32),    # h carry across time chunks
                        pltpu.VMEM((Bp, Hp), f32)],   # c carry across time chunks
        compiler_params=pltpu.CompilerParams(
            dimension_semantics=("arbitrary",),
            vmem_limit_bytes=vmem_limit),
        cost_estimate=cost,
    )(gx_seq, w_hh_t, w_out_t, b_out2)

    return probs_p[:B, :], h_p[:B, :H]


def rnn_encoder_reference(x_idx, params):
    """Pure-JAX f32 reference mirroring the PyTorch forward."""
    emb = params['embedding'][x_idx]                                   # (B, T, D_in)
    xe = jnp.maximum(emb @ params['w_in'].T + params['b_in'], 0.0)     # (B, T, E)
    B, T, _ = xe.shape
    H = params['w_hh'].shape[1]
    h = jnp.zeros((B, H), jnp.float32)
    c = jnp.zeros((B, H), jnp.float32)
    for t in range(T):
        g = (xe[:, t, :] @ params['w_ih'].T + params['b_ih']
             + h @ params['w_hh'].T + params['b_hh'])
        i_g = jax.nn.sigmoid(g[:, 0:H])
        f_g = jax.nn.sigmoid(g[:, H:2 * H])
        g_g = jnp.tanh(g[:, 2 * H:3 * H])
        o_g = jax.nn.sigmoid(g[:, 3 * H:4 * H])
        c = f_g * c + i_g * g_g
        h = o_g * jnp.tanh(c)
    logits = h @ params['w_out'].T + params['b_out']
    return jax.nn.softmax(logits, axis=-1), h


if __name__ == "__main__":
    # Small shapes consistent with the module: input_size 16, embedding_size 32,
    # hidden_size 32, class_num 8, item_num 50, batch 2, seq 32.
    item_num, D_in, E, H, C = 50, 16, 32, 32, 8
    B, T = 2, 32

    key = jax.random.PRNGKey(0)
    keys = jax.random.split(key, 10)
    params = {
        'embedding': jax.random.normal(keys[0], (item_num, D_in), jnp.float32),
        'w_in':  0.1 * jax.random.normal(keys[1], (E, D_in), jnp.float32),
        'b_in':  0.1 * jax.random.normal(keys[2], (E,), jnp.float32),
        'w_ih':  0.1 * jax.random.normal(keys[3], (4 * H, E), jnp.float32),
        'w_hh':  0.1 * jax.random.normal(keys[4], (4 * H, H), jnp.float32),
        'b_ih':  0.1 * jax.random.normal(keys[5], (4 * H,), jnp.float32),
        'b_hh':  0.1 * jax.random.normal(keys[6], (4 * H,), jnp.float32),
        'w_out': 0.1 * jax.random.normal(keys[7], (C, H), jnp.float32),
        'b_out': 0.1 * jax.random.normal(keys[8], (C,), jnp.float32),
    }
    x_idx = jax.random.randint(keys[9], (B, T), 0, item_num, dtype=jnp.int32)

    # time_block=8 -> 4 time chunks (exercises the VMEM state carry).
    probs, h = rnn_encoder_forward(x_idx, params, time_block=8)
    jax.block_until_ready((probs, h))

    ref_probs, ref_h = rnn_encoder_reference(x_idx, params)
    assert probs.shape == (B, C) and h.shape == (B, H)
    assert bool(jnp.allclose(jnp.sum(probs, axis=-1), 1.0, atol=1e-3))
    # Gate table is f32; only the recurrence / output matmuls use bf16 operands
    # (f32 accumulation) -> modest tolerance vs the f32 reference.
    assert bool(jnp.allclose(probs, ref_probs, atol=2e-2, rtol=2e-2))
    assert bool(jnp.allclose(h, ref_h, atol=2e-2, rtol=2e-2))
    print("KERNEL_OK")
</pallas_src>

<mosaic_0001>
module attributes {stable_mosaic.version = 11 : i64} {
  func.func @rnn_encoder_kernel(%arg0: i32, %arg1: memref<8x8x512xf32, #tpu.memory_space<vmem>>, %arg2: memref<128x512xbf16, #tpu.memory_space<vmem>>, %arg3: memref<128x8xbf16, #tpu.memory_space<vmem>>, %arg4: memref<1x8xf32, #tpu.memory_space<vmem>>, %arg5: memref<8x8xf32, #tpu.memory_space<vmem>>, %arg6: memref<8x128xf32, #tpu.memory_space<vmem>>, %arg7: memref<8x128xf32, #tpu.memory_space<vmem>>, %arg8: memref<8x128xf32, #tpu.memory_space<vmem>>) attributes {dimension_semantics = [#tpu.dimension_semantics<arbitrary>], iteration_bounds = array<i64: 4>, scalar_prefetch = 0 : i64, scratch_operands = 2 : i64, tpu.core_type = #tpu.core_type<tc>, window_params = [{transform_indices = @transform_0, window_bounds = array<i64: 8, 8, 512>}, {pipeline_mode = #tpu.pipeline_mode<synchronous>, transform_indices = @transform_1, window_bounds = array<i64: 128, 512>}, {pipeline_mode = #tpu.pipeline_mode<synchronous>, transform_indices = @transform_2, window_bounds = array<i64: 128, 8>}, {pipeline_mode = #tpu.pipeline_mode<synchronous>, transform_indices = @transform_3, window_bounds = array<i64: 1, 8>}, {pipeline_mode = #tpu.pipeline_mode<synchronous>, transform_indices = @transform_4, window_bounds = array<i64: 8, 8>}, {pipeline_mode = #tpu.pipeline_mode<synchronous>, transform_indices = @transform_5, window_bounds = array<i64: 8, 128>}]} {
    %c0_i32 = arith.constant 0 : i32
    %0 = arith.cmpi eq, %arg0, %c0_i32 : i32
    %1 = arith.extui %0 : i1 to i32
    %c0_i32_0 = arith.constant 0 : i32
    %2 = arith.cmpi ne, %1, %c0_i32_0 : i32
    scf.if %2 {
      %cst = arith.constant 0.000000e+00 : f32
      %13 = vector.broadcast %cst : f32 to vector<8x128xf32>
      %c0_13 = arith.constant 0 : index
      %c0_14 = arith.constant 0 : index
      %14 = vector.load %arg7[%c0_13, %c0_14] : memref<8x128xf32, #tpu.memory_space<vmem>>, vector<8x128xf32>
      tpu.vector_store %arg7[%c0_13, %c0_14], %13 {strides = array<i32>} : memref<8x128xf32, #tpu.memory_space<vmem>>, vector<8x128xf32>,
      %cst_15 = arith.constant 0.000000e+00 : f32
      %15 = vector.broadcast %cst_15 : f32 to vector<8x128xf32>
      %c0_16 = arith.constant 0 : index
      %c0_17 = arith.constant 0 : index
      %16 = vector.load %arg8[%c0_16, %c0_17] : memref<8x128xf32, #tpu.memory_space<vmem>>, vector<8x128xf32>
      tpu.vector_store %arg8[%c0_16, %c0_17], %15 {strides = array<i32>} : memref<8x128xf32, #tpu.memory_space<vmem>>, vector<8x128xf32>,
    } else {
    }
    %c0 = arith.constant 0 : index
    %c0_1 = arith.constant 0 : index
    %3 = vector.load %arg2[%c0, %c0_1] : memref<128x512xbf16, #tpu.memory_space<vmem>>, vector<128x512xbf16>
    %c0_2 = arith.constant 0 : index
    %c0_3 = arith.constant 0 : index
    %4 = vector.load %arg7[%c0_2, %c0_3] : memref<8x128xf32, #tpu.memory_space<vmem>>, vector<8x128xf32>
    %c0_4 = arith.constant 0 : index
    %c0_5 = arith.constant 0 : index
    %5 = vector.load %arg8[%c0_4, %c0_5] : memref<8x128xf32, #tpu.memory_space<vmem>>, vector<8x128xf32>
    %c0_i32_6 = arith.constant 0 : i32
    %c2_i32 = arith.constant 2 : i32
    %6 = arith.addi %c0_i32_6, %c2_i32 : i32
    %c1_i32 = arith.constant 1 : i32
    %7:2 = scf.for %arg9 = %c0_i32_6 to %6 step %c1_i32 iter_args(%arg10 = %4, %arg11 = %5) -> (vector<8x128xf32>, vector<8x128xf32>)  : i32 {
      %c4_i32 = arith.constant 4 : i32
      %13 = arith.muli %arg9, %c4_i32 : i32
      %c0_i32_13 = arith.constant 0 : i32
      %14 = arith.addi %13, %c0_i32_13 : i32
      %15 = arith.truncf %arg10 : vector<8x128xf32> to vector<8x128xbf16>
      %cst = arith.constant dense<0.000000e+00> : vector<8x512xf32>
      %16 = tpu.matmul %15, %3, %cst {dimension_numbers = #tpu.dot_dimension_numbers<[1], [0], [0], [1], [0, 0, 1, 1], [], []>} : vector<8x128xbf16>, vector<128x512xbf16>, vector<8x512xf32> -> vector<8x512xf32>
      %17 = arith.index_cast %14 : i32 to index
      %c0_14 = arith.constant 0 : index
      %c0_15 = arith.constant 0 : index
      %18 = vector.load %arg1[%17, %c0_14, %c0_15] : memref<8x8x512xf32, #tpu.memory_space<vmem>>, vector<1x8x512xf32>
      %19 = vector.shape_cast %18 : vector<1x8x512xf32> to vector<8x512xf32>
      %20 = arith.addf %19, %16 : vector<8x512xf32>
      %21 = vector.extract_strided_slice %20 {offsets = [0, 0], sizes = [8, 384], strides = [1, 1]} : vector<8x512xf32> to vector<8x384xf32>
      %22 = arith.negf %21 : vector<8x384xf32>
      %23 = math.exp %22 : vector<8x384xf32>
      %cst_16 = arith.constant 1.000000e+00 : f32
      %24 = vector.broadcast %cst_16 : f32 to vector<8x384xf32>
      %25 = arith.addf %24, %23 : vector<8x384xf32>
      %26 = arith.divf %24, %25 : vector<8x384xf32>
      %27 = vector.extract_strided_slice %20 {offsets = [0, 384], sizes = [8, 128], strides = [1, 1]} : vector<8x512xf32> to vector<8x128xf32>
      %28 = math.tanh %27 : vector<8x128xf32>
      %29 = vector.extract_strided_slice %26 {offsets = [0, 0], sizes = [8, 128], strides = [1, 1]} : vector<8x384xf32> to vector<8x128xf32>
      %30 = vector.extract_strided_slice %26 {offsets = [0, 128], sizes = [8, 128], strides = [1, 1]} : vector<8x384xf32> to vector<8x128xf32>
      %31 = vector.extract_strided_slice %26 {offsets = [0, 256], sizes = [8, 128], strides = [1, 1]} : vector<8x384xf32> to vector<8x128xf32>
      %32 = arith.mulf %30, %arg11 : vector<8x128xf32>
      %33 = arith.mulf %29, %28 : vector<8x128xf32>
      %34 = arith.addf %32, %33 : vector<8x128xf32>
      %35 = math.tanh %34 : vector<8x128xf32>
      %36 = arith.mulf %31, %35 : vector<8x128xf32>
      %c4_i32_17 = arith.constant 4 : i32
      %37 = arith.muli %arg9, %c4_i32_17 : i32
      %c1_i32_18 = arith.constant 1 : i32
      %38 = arith.addi %37, %c1_i32_18 : i32
      %39 = arith.truncf %36 : vector<8x128xf32> to vector<8x128xbf16>
      %cst_19 = arith.constant dense<0.000000e+00> : vector<8x512xf32>
      %40 = tpu.matmul %39, %3, %cst_19 {dimension_numbers = #tpu.dot_dimension_numbers<[1], [0], [0], [1], [0, 0, 1, 1], [], []>} : vector<8x128xbf16>, vector<128x512xbf16>, vector<8x512xf32> -> vector<8x512xf32>
      %41 = arith.index_cast %38 : i32 to index
      %c0_20 = arith.constant 0 : index
      %c0_21 = arith.constant 0 : index
      %42 = vector.load %arg1[%41, %c0_20, %c0_21] : memref<8x8x512xf32, #tpu.memory_space<vmem>>, vector<1x8x512xf32>
      %43 = vector.shape_cast %42 : vector<1x8x512xf32> to vector<8x512xf32>
      %44 = arith.addf %43, %40 : vector<8x512xf32>
      %45 = vector.extract_strided_slice %44 {offsets = [0, 0], sizes = [8, 384], strides = [1, 1]} : vector<8x512xf32> to vector<8x384xf32>
      %46 = arith.negf %45 : vector<8x384xf32>
      %47 = math.exp %46 : vector<8x384xf32>
      %cst_22 = arith.constant 1.000000e+00 : f32
      %48 = vector.broadcast %cst_22 : f32 to vector<8x384xf32>
      %49 = arith.addf %48, %47 : vector<8x384xf32>
      %50 = arith.divf %48, %49 : vector<8x384xf32>
      %51 = vector.extract_strided_slice %44 {offsets = [0, 384], sizes = [8, 128], strides = [1, 1]} : vector<8x512xf32> to vector<8x128xf32>
      %52 = math.tanh %51 : vector<8x128xf32>
      %53 = vector.extract_strided_slice %50 {offsets = [0, 0], sizes = [8, 128], strides = [1, 1]} : vector<8x384xf32> to vector<8x128xf32>
      %54 = vector.extract_strided_slice %50 {offsets = [0, 128], sizes = [8, 128], strides = [1, 1]} : vector<8x384xf32> to vector<8x128xf32>
      %55 = vector.extract_strided_slice %50 {offsets = [0, 256], sizes = [8, 128], strides = [1, 1]} : vector<8x384xf32> to vector<8x128xf32>
      %56 = arith.mulf %54, %34 : vector<8x128xf32>
      %57 = arith.mulf %53, %52 : vector<8x128xf32>
      %58 = arith.addf %56, %57 : vector<8x128xf32>
      %59 = math.tanh %58 : vector<8x128xf32>
      %60 = arith.mulf %55, %59 : vector<8x128xf32>
      %c4_i32_23 = arith.constant 4 : i32
      %61 = arith.muli %arg9, %c4_i32_23 : i32
      %c2_i32_24 = arith.constant 2 : i32
      %62 = arith.addi %61, %c2_i32_24 : i32
      %63 = arith.truncf %60 : vector<8x128xf32> to vector<8x128xbf16>
      %cst_25 = arith.constant dense<0.000000e+00> : vector<8x512xf32>
      %64 = tpu.matmul %63, %3, %cst_25 {dimension_numbers = #tpu.dot_dimension_numbers<[1], [0], [0], [1], [0, 0, 1, 1], [], []>} : vector<8x128xbf16>, vector<128x512xbf16>, vector<8x512xf32> -> vector<8x512xf32>
      %65 = arith.index_cast %62 : i32 to index
      %c0_26 = arith.constant 0 : index
      %c0_27 = arith.constant 0 : index
      %66 = vector.load %arg1[%65, %c0_26, %c0_27] : memref<8x8x512xf32, #tpu.memory_space<vmem>>, vector<1x8x512xf32>
      %67 = vector.shape_cast %66 : vector<1x8x512xf32> to vector<8x512xf32>
      %68 = arith.addf %67, %64 : vector<8x512xf32>
      %69 = vector.extract_strided_slice %68 {offsets = [0, 0], sizes = [8, 384], strides = [1, 1]} : vector<8x512xf32> to vector<8x384xf32>
      %70 = arith.negf %69 : vector<8x384xf32>
      %71 = math.exp %70 : vector<8x384xf32>
      %cst_28 = arith.constant 1.000000e+00 : f32
      %72 = vector.broadcast %cst_28 : f32 to vector<8x384xf32>
      %73 = arith.addf %72, %71 : vector<8x384xf32>
      %74 = arith.divf %72, %73 : vector<8x384xf32>
      %75 = vector.extract_strided_slice %68 {offsets = [0, 384], sizes = [8, 128], strides = [1, 1]} : vector<8x512xf32> to vector<8x128xf32>
      %76 = math.tanh %75 : vector<8x128xf32>
      %77 = vector.extract_strided_slice %74 {offsets = [0, 0], sizes = [8, 128], strides = [1, 1]} : vector<8x384xf32> to vector<8x128xf32>
      %78 = vector.extract_strided_slice %74 {offsets = [0, 128], sizes = [8, 128], strides = [1, 1]} : vector<8x384xf32> to vector<8x128xf32>
      %79 = vector.extract_strided_slice %74 {offsets = [0, 256], sizes = [8, 128], strides = [1, 1]} : vector<8x384xf32> to vector<8x128xf32>
      %80 = arith.mulf %78, %58 : vector<8x128xf32>
      %81 = arith.mulf %77, %76 : vector<8x128xf32>
      %82 = arith.addf %80, %81 : vector<8x128xf32>
      %83 = math.tanh %82 : vector<8x128xf32>
      %84 = arith.mulf %79, %83 : vector<8x128xf32>
      %c4_i32_29 = arith.constant 4 : i32
      %85 = arith.muli %arg9, %c4_i32_29 : i32
      %c3_i32_30 = arith.constant 3 : i32
      %86 = arith.addi %85, %c3_i32_30 : i32
      %87 = arith.truncf %84 : vector<8x128xf32> to vector<8x128xbf16>
      %cst_31 = arith.constant dense<0.000000e+00> : vector<8x512xf32>
      %88 = tpu.matmul %87, %3, %cst_31 {dimension_numbers = #tpu.dot_dimension_numbers<[1], [0], [0], [1], [0, 0, 1, 1], [], []>} : vector<8x128xbf16>, vector<128x512xbf16>, vector<8x512xf32> -> vector<8x512xf32>
      %89 = arith.index_cast %86 : i32 to index
      %c0_32 = arith.constant 0 : index
      %c0_33 = arith.constant 0 : index
      %90 = vector.load %arg1[%89, %c0_32, %c0_33] : memref<8x8x512xf32, #tpu.memory_space<vmem>>, vector<1x8x512xf32>
      %91 = vector.shape_cast %90 : vector<1x8x512xf32> to vector<8x512xf32>
      %92 = arith.addf %91, %88 : vector<8x512xf32>
      %93 = vector.extract_strided_slice %92 {offsets = [0, 0], sizes = [8, 384], strides = [1, 1]} : vector<8x512xf32> to vector<8x384xf32>
      %94 = arith.negf %93 : vector<8x384xf32>
      %95 = math.exp %94 : vector<8x384xf32>
      %cst_34 = arith.constant 1.000000e+00 : f32
      %96 = vector.broadcast %cst_34 : f32 to vector<8x384xf32>
      %97 = arith.addf %96, %95 : vector<8x384xf32>
      %98 = arith.divf %96, %97 : vector<8x384xf32>
      %99 = vector.extract_strided_slice %92 {offsets = [0, 384], sizes = [8, 128], strides = [1, 1]} : vector<8x512xf32> to vector<8x128xf32>
      %100 = math.tanh %99 : vector<8x128xf32>
      %101 = vector.extract_strided_slice %98 {offsets = [0, 0], sizes = [8, 128], strides = [1, 1]} : vector<8x384xf32> to vector<8x128xf32>
      %102 = vector.extract_strided_slice %98 {offsets = [0, 128], sizes = [8, 128], strides = [1, 1]} : vector<8x384xf32> to vector<8x128xf32>
      %103 = vector.extract_strided_slice %98 {offsets = [0, 256], sizes = [8, 128], strides = [1, 1]} : vector<8x384xf32> to vector<8x128xf32>
      %104 = arith.mulf %102, %82 : vector<8x128xf32>
      %105 = arith.mulf %101, %100 : vector<8x128xf32>
      %106 = arith.addf %104, %105 : vector<8x128xf32>
      %107 = math.tanh %106 : vector<8x128xf32>
      %108 = arith.mulf %103, %107 : vector<8x128xf32>
      scf.yield %108, %106 : vector<8x128xf32>, vector<8x128xf32>
    }
    %c2_i32_7 = arith.constant 2 : i32
    %c0_8 = arith.constant 0 : index
    %c0_9 = arith.constant 0 : index
    %8 = vector.load %arg7[%c0_8, %c0_9] : memref<8x128xf32, #tpu.memory_space<vmem>>, vector<8x128xf32>
    tpu.vector_store %arg7[%c0_8, %c0_9], %7#0 {strides = array<i32>} : memref<8x128xf32, #tpu.memory_space<vmem>>, vector<8x128xf32>,
    %c0_10 = arith.constant 0 : index
    %c0_11 = arith.constant 0 : index
    %9 = vector.load %arg8[%c0_10, %c0_11] : memref<8x128xf32, #tpu.memory_space<vmem>>, vector<8x128xf32>
    tpu.vector_store %arg8[%c0_10, %c0_11], %7#1 {strides = array<i32>} : memref<8x128xf32, #tpu.memory_space<vmem>>, vector<8x128xf32>,
    %c3_i32 = arith.constant 3 : i32
    %10 = arith.cmpi eq, %arg0, %c3_i32 : i32
    %11 = arith.extui %10 : i1 to i32
    %c0_i32_12 = arith.constant 0 : i32
    %12 = arith.cmpi ne, %11, %c0_i32_12 : i32
    scf.if %12 {
      %13 = arith.truncf %7#0 : vector<8x128xf32> to vector<8x128xbf16>
      %c0_13 = arith.constant 0 : index
      %c0_14 = arith.constant 0 : index
      %14 = vector.load %arg3[%c0_13, %c0_14] : memref<128x8xbf16, #tpu.memory_space<vmem>>, vector<128x8xbf16>
      %cst = arith.constant dense<0.000000e+00> : vector<8x8xf32>
      %15 = tpu.matmul %13, %14, %cst {dimension_numbers = #tpu.dot_dimension_numbers<[1], [0], [0], [1], [0, 0, 1, 1], [], []>} : vector<8x128xbf16>, vector<128x8xbf16>, vector<8x8xf32> -> vector<8x8xf32>
      %c0_15 = arith.constant 0 : index
      %c0_16 = arith.constant 0 : index
      %16 = vector.load %arg4[%c0_15, %c0_16] : memref<1x8xf32, #tpu.memory_space<vmem>>, vector<1x8xf32>
      %17 = vector.broadcast %16 : vector<1x8xf32> to vector<8x8xf32>
      %18 = arith.addf %15, %17 : vector<8x8xf32>
      %cst_17 = arith.constant dense<0xFF800000> : vector<8xf32>
      %19 = vector.multi_reduction <maximumf>, %18, %cst_17 [1] : vector<8x8xf32> to vector<8xf32>
      %20 = vector.shape_cast %19 : vector<8xf32> to vector<8x1xf32>
      %21 = vector.broadcast %20 : vector<8x1xf32> to vector<8x8xf32>
      %22 = arith.subf %18, %21 : vector<8x8xf32>
      %23 = math.exp %22 : vector<8x8xf32>
      %cst_18 = arith.constant dense<0.000000e+00> : vector<8xf32>
      %24 = vector.multi_reduction <add>, %23, %cst_18 [1] : vector<8x8xf32> to vector<8xf32>
      %25 = vector.shape_cast %24 : vector<8xf32> to vector<8x1xf32>
      %26 = vector.broadcast %25 : vector<8x1xf32> to vector<8x8xf32>
      %27 = arith.divf %23, %26 : vector<8x8xf32>
      %c0_19 = arith.constant 0 : index
      %c0_20 = arith.constant 0 : index
      %28 = vector.load %arg5[%c0_19, %c0_20] : memref<8x8xf32, #tpu.memory_space<vmem>>, vector<8x8xf32>
      tpu.vector_store %arg5[%c0_19, %c0_20], %27 {strides = array<i32>} : memref<8x8xf32, #tpu.memory_space<vmem>>, vector<8x8xf32>,
      %c0_21 = arith.constant 0 : index
      %c0_22 = arith.constant 0 : index
      %29 = vector.load %arg6[%c0_21, %c0_22] : memref<8x128xf32, #tpu.memory_space<vmem>>, vector<8x128xf32>
      tpu.vector_store %arg6[%c0_21, %c0_22], %7#0 {strides = array<i32>} : memref<8x128xf32, #tpu.memory_space<vmem>>, vector<8x128xf32>,
    } else {
    }
    return
  }
  func.func @transform_0(%arg0: i32) -> (i32, i32, i32) {
    %c0_i32 = arith.constant 0 : i32
    %c0_i32_0 = arith.constant 0 : i32
    %c0_i32_1 = arith.constant 0 : i32
    return %arg0, %c0_i32, %c0_i32_0 : i32, i32, i32
  }
  func.func @transform_1(%arg0: i32) -> (i32, i32) {
    %c0_i32 = arith.constant 0 : i32
    %c0_i32_0 = arith.constant 0 : i32
    %c0_i32_1 = arith.constant 0 : i32
    return %c0_i32, %c0_i32_0 : i32, i32
  }
  func.func @transform_2(%arg0: i32) -> (i32, i32) {
    %c0_i32 = arith.constant 0 : i32
    %c0_i32_0 = arith.constant 0 : i32
    %c0_i32_1 = arith.constant 0 : i32
    return %c0_i32, %c0_i32_0 : i32, i32
  }
  func.func @transform_3(%arg0: i32) -> (i32, i32) {
    %c0_i32 = arith.constant 0 : i32
    %c0_i32_0 = arith.constant 0 : i32
    %c0_i32_1 = arith.constant 0 : i32
    return %c0_i32, %c0_i32_0 : i32, i32
  }
  func.func @transform_4(%arg0: i32) -> (i32, i32) {
    %c0_i32 = arith.constant 0 : i32
    %c0_i32_0 = arith.constant 0 : i32
    %c0_i32_1 = arith.constant 0 : i32
    return %c0_i32, %c0_i32_0 : i32, i32
  }
  func.func @transform_5(%arg0: i32) -> (i32, i32) {
    %c0_i32 = arith.constant 0 : i32
    %c0_i32_0 = arith.constant 0 : i32
    %c0_i32_1 = arith.constant 0 : i32
    return %c0_i32, %c0_i32_0 : i32, i32
  }
}

</mosaic_0001>

<bundles_post_ra>
// kernel: tpu_custom_call.1
= control target key start
LH: loop header
LB: loop body
LE: loop exit
PB: predicated region body
PF: predicated region fallthrough
CT: control target
= control target key end

     0   :  { %11 = vsyncpa [#allocation5], 0  ;;  %s2258_s0 = inlined_call_operand.hbm [shape: f32[32,8,512], index: 0, kind: input, shape index: {}]   ;;  %s2259_s1 = inlined_call_operand.hbm [shape: bf16[128,512], index: 1, kind: input, shape index: {}]   ;;  %s2260_s2 = inlined_call_operand.vmem [shape: bf16[128,8], index: 2, kind: input, shape index: {}]   ;;  %s2261_s3 = inlined_call_operand.vmem [shape: f32[1,8], index: 3, kind: input, shape index: {}]   ;;  %s2262_s4 = inlined_call_operand.hbm [shape: f32[8,8], index: 4, kind: output, shape index: {0}]   ;;  %s2263_s5 = inlined_call_operand.hbm [shape: f32[8,128], index: 5, kind: output, shape index: {1}]  }
   0x1   :  { %13 = vsyncpa [#allocation5 + $0x1], 0 }
   0x2   :  { %14 = vsyncpa [#allocation8], 0 }
   0x3   :  { %15 = vsyncpa [#allocation6], 0 }
   0x4   :  { %16 = vsyncpa [#allocation11], 0  ;;  %s1695_s18 = smov 0   ;;  %s1697_s19 = smov 0  }
   0x5   :  { %s1699_s20 = smov 0   ;;  %s1701_s21 = smov 0  }
   0x6 LB: > { %s1714_s22 = sadd.s32 4294967295, %s1639_s21   ;;  %p42_p0 = scmp.ne.s32.totalorder %s1631_s19, %s1627_s18  ;;  %s1639_s21 = sphi %s1701_s21, %s2353_s21   ;;  %s1635_s20 = sphi %s1699_s20, %s2352_s20   ;;  %s1631_s19 = sphi %s1697_s19, %s2351_s19   ;;  %s1627_s18 = sphi %s1695_s18, %s2350_s18  }
   0x7   : > { %p2264_p1 = scmp.eq.s32.totalorder %s1714_s22, 0  ;;  %p1179_p2 = scmp.ge.s32.totalorder %s1639_s21, 1 }
   0x8   : > { %p158_p3 = scmp.lt.s32.totalorder %s1639_s21, 5  ;;  %s1653_s25 = smov [#allocation7]  }
   0x9   : > { %p1723_p5 = por %p2264_p1, %p42_p0  ;;  %s170_s26 = sshll.u32 %s1653_s25, 4  ;;  %s171_s26 = int_to_ptr.vmem [resolvable:$true] %s170_s26 }
   0xa   : > { %p1727_p6 = pnand %p1179_p2, %p158_p3  ;;  %s1740_s28 = sadd.s32 1, %s1639_s21  }
   0xb   : > { %s2292_s23 = scalar_select %p1723_p5, 1, 0 }
   0xc   : > { %s2293_s24 = scalar_select %p1727_p6, 1, 0 }
   0xd   : > { %p1321_p7 = pneg %p1727_p6  ;;  %s29_s29 = sadd.s32 1, %s1635_s20 }
   0xe   : > { %s26_s30 = ssub.s32 %s1639_s21, %s1740_s28  ;;  %s1490_s6 = scalar_lea.vmem %s171_s26, 4096 }
   0xf   : > { %p1735_p8 = pnand %p1321_p7, %p2264_p1  ;;  %p1491_p10 = scmp.ne.s32.totalorder %s171_s26, %s1490_s6 }
  0x10   : > { %p1498_p13 = scmp.lt.s32.totalorder %s171_s26, %s171_s26  ;;  %p1499_p0 = scmp.lt.s32.totalorder %s1490_s6, %s1490_s6 }
  0x11   : > { %p1481_p9 = pneg %p1735_p8 }
  0x12   : > { %p1500_p2 = por %p1499_p0, %p1498_p13 }
  0x13   : > { %p1493_p11 = pnand %p1491_p10, %p1481_p9 }
  0x15   : > { %p1494_p12 = pneg %p1493_p11 }
  0x17   : > { %p1501_p3 = pnand %p1500_p2, %p1494_p12 }
  0x19   : > { %1504 = shalt.err (!%p1501_p3)
}
  0x1a   : > { %s1654_s7 = smov 256   ;;  %s1655_s8 = smov 16  }
  0x1b   : > { %1324 = dma.hbm_to_vmem [thread:$0]  (!%p1735_p8), %s2259_s1, 4096, %s171_s26, [#allocation8], %s1654_s7, %s1654_s7, %s1655_s8  }
  0x1c   : > { %p27_p7 = scmp.eq.s32.totalorder %s26_s30, 0  ;;  %p36_p9 = scmp.ne.s32.totalorder %s1635_s20, %s1631_s19 }
  0x1d   : > { %p37_p10 = scmp.eq.s32.totalorder %s1639_s21, 0  ;;  %p1330_p11 = scmp.lt.s32.totalorder %s1639_s21, 4 }
  0x1e   : > { %s1757_s11 = scalar_select %p27_p7, %s1635_s20, %s29_s29  }
  0x1f   : > { %p38_p12 = por %p37_p10, %p36_p9  ;;  %s190_s12 = sand.u32 1, %s1635_s20  }
  0x20   : > { %s1182_s13 = sshll.u32 %s190_s12, 8  ;;  %s1272_s14 = sshll.u32 %s1639_s21, 12 }
  0x21   : > { %s1764_s17 = scalar_lea.hbm %s2258_s0, %s1272_s14  ;;  %s194_s18 = scalar_lea.vmem [#allocation4], %s1182_s13 }
  0x22   : > { %s202_s25 = sshll.u32 %s194_s18, 4  ;;  %p1768_p8 = pnand %p1330_p11, %p38_p12  ;;  %s1766_s25 = int_to_ptr.vmem [resolvable:$true] %s202_s25 }
  0x23   : > { %s1772_s27 = scalar_lea.sflag [#allocation5], %s190_s12  ;;  %s1505_s21 = scalar_lea.hbm %s1764_s17, 4096 }
  0x24   : > { %p1506_p13 = scmp.ne.s32.totalorder %s1764_s17, %s1505_s21  ;;  %p1507_p0 = pneg %p1768_p8 }
  0x25   : > { %s1510_s6 = scalar_lea.hbm %s2258_s0, 16384  ;;  %p1511_p7 = scmp.lt.s32.totalorder %s1764_s17, %s2258_s0 }
  0x26   : > { %p1508_p2 = pnand %p1507_p0, %p1506_p13  ;;  %p1512_p9 = scmp.lt.s32.totalorder %s1510_s6, %s1505_s21 }
  0x28   : > { %p1509_p3 = pneg %p1508_p2  ;;  %p1513_p10 = por %p1512_p9, %p1511_p7 }
  0x2a   : > { %p1514_p11 = pnand %p1513_p10, %p1509_p3 }
  0x2c   : > { %1517 = shalt.err (!%p1514_p11)
}
  0x2d   : > { %s1518_s9 = scalar_lea.vmem %s1766_s25, 4096  ;;  %s1656_s10 = smov [#allocation4]  }
  0x2e   : > { %p1519_p12 = scmp.ne.s32.totalorder %s1766_s25, %s1518_s9  ;;  %s1523_s12 = sshll.u32 %s1656_s10, 4  ;;  %s1524_s12 = int_to_ptr.vmem [resolvable:$false] %s1523_s12 }
  0x2f   : > { %s1525_s13 = scalar_lea.vmem %s1524_s12, 8192  ;;  %p1526_p2 = scmp.lt.s32.totalorder %s1766_s25, %s1524_s12 }
  0x30   : > { %p1521_p4 = pnand %p1519_p12, %p1507_p0  ;;  %p1527_p1 = scmp.lt.s32.totalorder %s1525_s13, %s1518_s9 }
  0x32   : > { %p1522_p13 = pneg %p1521_p4  ;;  %p1528_p5 = por %p1527_p1, %p1526_p2 }
  0x34   : > { %p1529_p6 = pnand %p1528_p5, %p1522_p13 }
  0x36   : > { %1532 = shalt.err (!%p1529_p6)
}
  0x37   : > { %s1657_s14 = smov 512   ;;  %s1658_s15 = smov 32  }
  0x38   : > { %1328 = dma.hbm_to_vmem [thread:$0]  (!%p1768_p8), %s1764_s17, 4096, %s1766_s25, %s1772_s27, %s1657_s14, %s1657_s14, %s1658_s15  }
  0x39   : > { %p2296_p0 = scmp.ne.s32.totalorder %s2293_s24, 0 }
  0x3b   : > { %214 = sbr.rel (%p2296_p0) target bundleno = 1707 (0x6ab), region = 36 }
  0x40   : > { %s216_s16 = sand.u32 1, %s1631_s19   ;;  %p2297_p1 = scmp.ne.s32.totalorder %s2292_s23, 0 }
  0x41   : > { %s1796_s18 = sshll.u32 %s216_s16, 8  ;;  %s217_s21 = scalar_lea.sflag [#allocation5], %s216_s16 }
  0x42   : > { %s220_s29 = scalar_lea.vmem [#allocation4], %s1796_s18 }
  0x43   : > { %1610 = dma.done.wait (%p2297_p1), %s217_s21, 4096  }
  0x44   : > { %1612 = vsyncadd (%p2297_p1), %s217_s21, 4294963200  ;;  %p2298_p4 = scmp.eq.s32.totalorder %s1714_s22, 0 }
  0x46   : > { %1614 = dma.done.wait (%p2298_p4), [#allocation8], 4096   ;;  %p2299_p5 = pmov %p2298_p4 }
  0x47   : > { %p2300_p6 = scmp.ne.s32.totalorder %s1714_s22, 0 }
  0x48   : > { %1616 = vsyncadd (%p2299_p5), [#allocation8], 4294963200 }
  0x49   : > { %251 = sbr.rel (%p2300_p6) target bundleno = 80 (0x50), region = 48 }
  0x4e   : > { %v1659_v0 = vmov 0.0  }
  0x4f   : > { %252 = vst [vmem:[#allocation2] sm:$0xff] %v1659_v0  ;;  %253 = vst [vmem:[#allocation3] sm:$0xff] %v1659_v0 }
  0x50 PF: > { %v1809_v1 = vld [vmem:[#allocation7] sm:$0xff]  ;;  %v1811_v2 = vld [vmem:[#allocation7 + $0x8] sm:$0xff]  ;;  %v1813_v3 = vld [vmem:[#allocation7 + $0x10] sm:$0xff]  ;;  %s1877_s23 = smov 0  }
  0x51   : > { %2301 = vst [vmem:[#allocation16_spill] sm:$0xff] %v1809_v1  ;;  %2302 = vst [vmem:[#allocation17_spill] sm:$0xff] %v1811_v2  ;;  %v1815_v4 = vld [vmem:[#allocation7 + $0x18] sm:$0xff]  ;;  %v1817_v5 = vld [vmem:[#allocation7 + $0x20] sm:$0xff] }
  0x52   : > { %2303 = vst [vmem:[#allocation18_spill] sm:$0xff] %v1813_v3  ;;  %2304 = vst [vmem:[#allocation19_spill] sm:$0xff] %v1815_v4  ;;  %v1819_v6 = vld [vmem:[#allocation7 + $0x28] sm:$0xff]  ;;  %v1821_v7 = vld [vmem:[#allocation7 + $0x30] sm:$0xff] }
  0x53   : > { %2305 = vst [vmem:[#allocation20_spill] sm:$0xff] %v1817_v5  ;;  %2306 = vst [vmem:[#allocation21_spill] sm:$0xff] %v1819_v6  ;;  %v1823_v8 = vld [vmem:[#allocation7 + $0x38] sm:$0xff]  ;;  %v1825_v9 = vld [vmem:[#allocation7 + $0x40] sm:$0xff] }
  0x54   : > { %2307 = vst [vmem:[#allocation22_spill] sm:$0xff] %v1821_v7  ;;  %2308 = vst [vmem:[#allocation23_spill] sm:$0xff] %v1823_v8  ;;  %v1827_v10 = vld [vmem:[#allocation7 + $0x48] sm:$0xff]  ;;  %v1829_v11 = vld [vmem:[#allocation7 + $0x50] sm:$0xff] }
  0x55   : > { %2309 = vst [vmem:[#allocation24_spill] sm:$0xff] %v1825_v9  ;;  %2310 = vst [vmem:[#allocation25_spill] sm:$0xff] %v1827_v10  ;;  %v1831_v12 = vld [vmem:[#allocation7 + $0x58] sm:$0xff]  ;;  %v1833_v13 = vld [vmem:[#allocation7 + $0x60] sm:$0xff] }
  0x56   : > { %2311 = vst [vmem:[#allocation26_spill] sm:$0xff] %v1829_v11  ;;  %2312 = vst [vmem:[#allocation27_spill] sm:$0xff] %v1831_v12  ;;  %v1835_v14 = vld [vmem:[#allocation7 + $0x68] sm:$0xff]  ;;  %v1837_v15 = vld [vmem:[#allocation7 + $0x70] sm:$0xff] }
  0x57   : > { %2313 = vst [vmem:[#allocation28_spill] sm:$0xff] %v1833_v13  ;;  %2314 = vst [vmem:[#allocation29_spill] sm:$0xff] %v1835_v14  ;;  %v1839_v16 = vld [vmem:[#allocation7 + $0x78] sm:$0xff]  ;;  %v1841_v17 = vld [vmem:[#allocation7 + $0x80] sm:$0xff] }
  0x58   : > { %2315 = vst [vmem:[#allocation30_spill] sm:$0xff] %v1837_v15  ;;  %2316 = vst [vmem:[#allocation31_spill] sm:$0xff] %v1839_v16  ;;  %v1843_v18 = vld [vmem:[#allocation7 + $0x88] sm:$0xff]  ;;  %v1845_v19 = vld [vmem:[#allocation7 + $0x90] sm:$0xff] }
  0x59   : > { %2317 = vst [vmem:[#allocation32_spill] sm:$0xff] %v1841_v17  ;;  %2318 = vst [vmem:[#allocation33_spill] sm:$0xff] %v1843_v18  ;;  %v1847_v20 = vld [vmem:[#allocation7 + $0x98] sm:$0xff]  ;;  %v1849_v21 = vld [vmem:[#allocation7 + $0xa0] sm:$0xff] }
  0x5a   : > { %2319 = vst [vmem:[#allocation34_spill] sm:$0xff] %v1845_v19  ;;  %2320 = vst [vmem:[#allocation35_spill] sm:$0xff] %v1847_v20  ;;  %v1851_v22 = vld [vmem:[#allocation7 + $0xa8] sm:$0xff]  ;;  %v1853_v23 = vld [vmem:[#allocation7 + $0xb0] sm:$0xff] }
  0x5b   : > { %2321 = vst [vmem:[#allocation36_spill] sm:$0xff] %v1849_v21  ;;  %2322 = vst [vmem:[#allocation37_spill] sm:$0xff] %v1851_v22  ;;  %v1855_v24 = vld [vmem:[#allocation7 + $0xb8] sm:$0xff]  ;;  %v1857_v25 = vld [vmem:[#allocation7 + $0xc0] sm:$0xff] }
  0x5c   : > { %2323 = vst [vmem:[#allocation38_spill] sm:$0xff] %v1853_v23  ;;  %v1859_v26 = vld [vmem:[#allocation7 + $0xc8] sm:$0xff]  ;;  %v1861_v27 = vld [vmem:[#allocation7 + $0xd0] sm:$0xff]  ;;  %v1863_v28 = vld [vmem:[#allocation7 + $0xd8] sm:$0xff] }
  0x5d   : > { %v1865_v29 = vld [vmem:[#allocation7 + $0xe0] sm:$0xff]  ;;  %v1867_v30 = vld [vmem:[#allocation7 + $0xe8] sm:$0xff]  ;;  %v1869_v31 = vld [vmem:[#allocation7 + $0xf0] sm:$0xff] }
  0x5e   : > { %v1871_v32 = vld [vmem:[#allocation7 + $0xf8] sm:$0xff]  ;;  %v286_v33 = vld [vmem:[#allocation2] sm:$0xff]  }
  0x5f   : > { %v287_v34 = vld [vmem:[#allocation3] sm:$0xff]  }
  0x60 LB: >> { %v2329_v18 = vld [vmem:[#allocation33_spill] sm:$0xff]  ;;  %v2330_v17 = vld [vmem:[#allocation32_spill] sm:$0xff]  ;;  %v2331_v16 = vld [vmem:[#allocation31_spill] sm:$0xff]  ;;  %v1890_v35 = vcombine.high %v1865_v29, %v1869_v31  ;;  %v1894_v36 = vcombine.low %v1865_v29, %v1869_v31  ;;  %v1898_v37 = vcombine.high %v1857_v25, %v1861_v27  ;;  %v1902_v38 = vcombine.high %v1867_v30, %v1871_v32  ;;  %s1274_s24 = sshll.u32 %s1651_s23, 7  ;;  %s293_s23 = sadd.s32 1, %s1651_s23   ;;  %v1647_v33 = vphi %v286_v33, %v2349_v33   ;;  %v1643_v34 = vphi %v287_v34, %v2348_v34   ;;  %s1651_s23 = sphi %s1877_s23, %s293_s23  }
  0x61   : >> { %v2327_v20 = vld [vmem:[#allocation35_spill] sm:$0xff]  ;;  %v2328_v19 = vld [vmem:[#allocation34_spill] sm:$0xff]  ;;  %v2333_v14 = vld [vmem:[#allocation29_spill] sm:$0xff]  ;;  %v1907_v39 = vcombine.low %v1867_v30, %v1871_v32  ;;  %v1911_v40 = vcombine.high %v1859_v26, %v1863_v28  ;;  %v1916_v41 = vcombine.low %v1857_v25, %v1861_v27  ;;  %v1927_v43 = vcombine.low %v1859_v26, %v1863_v28  ;;  %s2091_s17 = scalar_lea.vmem %s220_s29, %s1274_s24 [#allocation4]  ;;  %p290_p8 = scmp.ge.s32.totalorder %s293_s23, 2  }
  0x62   : >> { %v2325_v22 = vld [vmem:[#allocation37_spill] sm:$0xff]  ;;  %v2326_v21 = vld [vmem:[#allocation36_spill] sm:$0xff]  ;;  %v2332_v15 = vld [vmem:[#allocation30_spill] sm:$0xff]  ;;  %458 = vmatprep.subr.bf16.mxu0 %v1890_v35  ;;  %499 = vmatprep.subr.bf16.mxu1 %v1902_v38  ;;  %v2267_v45 = vmov 0   ;;  %v1944_v47 = vcombine.high %v2330_v17, %v2328_v19  ;;  %v1954_v49 = vcombine.high %v2329_v18, %v2327_v20  ;;  %v1959_v50 = vcombine.low %v2330_v17, %v2328_v19  ;;  %p1255_p3 = scmp.ne.s32.totalorder (%p290_p8), %s1714_s22, 3 }
  0x63   : >> { %v2324_v23 = vld [vmem:[#allocation38_spill] sm:$0xff]  ;;  %v2334_v13 = vld [vmem:[#allocation28_spill] sm:$0xff]  ;;  %v2335_v12 = vld [vmem:[#allocation27_spill] sm:$0xff]  ;;  %459 = vmatpush1.bf16.msra.mxu0 %v1894_v36  ;;  %500 = vmatpush1.bf16.msra.mxu1 %v1907_v39  ;;  %v1932_v44 = vcombine.high %v2325_v22, %v1855_v24  ;;  %v1949_v48 = vcombine.low %v2325_v22, %v1855_v24  ;;  %v1969_v52 = vcombine.low %v2329_v18, %v2327_v20 }
  0x64   : >> { %v2336_v11 = vld [vmem:[#allocation26_spill] sm:$0xff]  ;;  %v2337_v10 = vld [vmem:[#allocation25_spill] sm:$0xff]  ;;  %v2338_v9 = vld [vmem:[#allocation24_spill] sm:$0xff]  ;;  %460 = vmatprep.subr.bf16.mxu0 %v1898_v37  ;;  %v1922_v42 = vcombine.high %v2326_v21, %v2324_v23  ;;  %501 = vmatprep.subr.bf16.mxu1 %v1911_v40  ;;  %v1938_v46 = vcombine.low %v2326_v21, %v2324_v23  ;;  %v1964_v51 = vcombine.high %v2334_v13, %v2332_v15 }
  0x65   : >> { %v2339_v8 = vld [vmem:[#allocation23_spill] sm:$0xff]  ;;  %v2341_v3 = vld [vmem:[#allocation18_spill] sm:$0xff]  ;;  %v2342_v2 = vld [vmem:[#allocation17_spill] sm:$0xff]  ;;  %490 = vmatprep.mubr.bf16.mxu0 %v2267_v45  ;;  %531 = vmatprep.mubr.bf16.mxu1 %v2267_v45  ;;  %v1974_v53 = vcombine.high %v2333_v14, %v2331_v16  ;;  %v1979_v54 = vcombine.low %v2334_v13, %v2332_v15  ;;  %v1984_v55 = vcombine.high %v2338_v9, %v2336_v11 }
  0x66   : >> { %v2340_v4 = vld [vmem:[#allocation19_spill] sm:$0xff]  ;;  %v2343_v1 = vld [vmem:[#allocation16_spill] sm:$0xff]  ;;  %v2344_v7 = vld [vmem:[#allocation22_spill] sm:$0xff]  ;;  %v1989_v56 = vcombine.low %v2333_v14, %v2331_v16  ;;  %v1994_v57 = vcombine.high %v2337_v10, %v2335_v12  ;;  %v1999_v58 = vcombine.low %v2338_v9, %v2336_v11  ;;  %v2009_v60 = vcombine.low %v2337_v10, %v2335_v12 }
  0x67   : >> { %v2345_v6 = vld [vmem:[#allocation21_spill] sm:$0xff]  ;;  %v2346_v5 = vld [vmem:[#allocation20_spill] sm:$0xff]  ;;  %461 = vmatpush1.bf16.msra.mxu0 %v1916_v41  ;;  %502 = vmatpush1.bf16.msra.mxu1 %v1927_v43  ;;  %v2024_v63 = vcombine.high %v2343_v1, %v2341_v3  ;;  %v2034_v45 = vcombine.high %v2342_v2, %v2340_v4  ;;  %v545_v17 = vld [vmem:[%s2091_s17 + $0x10] sm:$0xff] }
  0x68   : >> { %462 = vmatprep.subr.bf16.mxu0 %v1922_v42  ;;  %503 = vmatprep.subr.bf16.mxu1 %v1932_v44  ;;  %v2004_v59 = vcombine.high %v2346_v5, %v2344_v7  ;;  %v2014_v61 = vcombine.high %v2345_v6, %v2339_v8  ;;  %v2019_v62 = vcombine.low %v2346_v5, %v2344_v7  ;;  %v546_v19 = vld [vmem:[%s2091_s17 + $0x18] sm:$0xff] }
  0x69   : >> { %v2029_v0 = vcombine.low %v2345_v6, %v2339_v8  ;;  %v2039_v5 = vcombine.low %v2343_v1, %v2341_v3  ;;  %v2045_v6 = vcombine.low %v2342_v2, %v2340_v4  ;;  %v297_v7 = vpack.c.bf16 %v1647_v33, %v1647_v33  ;;  %v544_v2 = vld [vmem:[%s2091_s17 + $0x8] sm:$0xff] }
  0x6a   : >> { %v2347_v1 = vmov 0  }
  0x6b   : >> { %463 = vmatpush1.bf16.msra.mxu0 %v1938_v46  ;;  %504 = vmatpush1.bf16.msra.mxu1 %v1949_v48 }
  0x6c   : >> { %464 = vmatprep.subr.bf16.mxu0 %v1944_v47  ;;  %505 = vmatprep.subr.bf16.mxu1 %v1954_v49 }
  0x6f   : >> { %465 = vmatpush1.bf16.msra.mxu0 %v1959_v50  ;;  %506 = vmatpush1.bf16.msra.mxu1 %v1969_v52 }
  0x70   : >> { %466 = vmatprep.subr.bf16.mxu0 %v1964_v51  ;;  %507 = vmatprep.subr.bf16.mxu1 %v1974_v53 }
  0x73   : >> { %467 = vmatpush1.bf16.msra.mxu0 %v1979_v54  ;;  %508 = vmatpush1.bf16.msra.mxu1 %v1989_v56 }
  0x74   : >> { %468 = vmatprep.subr.bf16.mxu0 %v1984_v55  ;;  %509 = vmatprep.subr.bf16.mxu1 %v1994_v57 }
  0x77   : >> { %469 = vmatpush1.bf16.msra.mxu0 %v1999_v58  ;;  %510 = vmatpush1.bf16.msra.mxu1 %v2009_v60 }
  0x78   : >> { %470 = vmatprep.subr.bf16.mxu0 %v2004_v59  ;;  %511 = vmatprep.subr.bf16.mxu1 %v2014_v61 }
  0x7b   : >> { %471 = vmatpush1.bf16.msra.mxu0 %v2019_v62  ;;  %512 = vmatpush1.bf16.msra.mxu1 %v2029_v0 }
  0x7c   : >> { %472 = vmatprep.subr.bf16.mxu0 %v2024_v63  ;;  %513 = vmatprep.subr.bf16.mxu1 %v2034_v45 }
  0x7f   : >> { %473 = vmatpush1.bf16.msra.mxu0 %v2039_v5  ;;  %514 = vmatpush1.bf16.msra.mxu1 %v2045_v6 }
  0x80   : >> { %577 = vmatprep.subr.bf16.mxu0 %v1890_v35  ;;  %618 = vmatprep.subr.bf16.mxu1 %v1902_v38 }
  0x82   : >> { %491 = vmatmul.mubr.bf16.vlgmr.msra.gmra.mxu0 %v297_v7  ;;  %532 = vmatmul.mubr.bf16.vlgmr.msra.gmra.mxu1 %v297_v7  ;;  %v543_v7 = vld [vmem:[%s2091_s17] sm:$0xff] }
  0x83   : >> { %578 = vmatpush1.bf16.msra.mxu0 %v1894_v36  ;;  %619 = vmatpush1.bf16.msra.mxu1 %v1907_v39 }
  0x84   : >> { %579 = vmatprep.subr.bf16.mxu0 %v1898_v37  ;;  %620 = vmatprep.subr.bf16.mxu1 %v1911_v40 }
  0x85   : >> { %609 = vmatprep.mubr.bf16.mxu0 %v2347_v1  ;;  %650 = vmatprep.mubr.bf16.mxu1 %v2347_v1 }
  0x87   : >> { %580 = vmatpush1.bf16.msra.mxu0 %v1916_v41  ;;  %621 = vmatpush1.bf16.msra.mxu1 %v1927_v43 }
  0x88   : >> { %581 = vmatprep.subr.bf16.mxu0 %v1922_v42  ;;  %622 = vmatprep.subr.bf16.mxu1 %v1932_v44 }
  0x8b   : >> { %582 = vmatpush1.bf16.msra.mxu0 %v1938_v46  ;;  %623 = vmatpush1.bf16.msra.mxu1 %v1949_v48 }
  0x8c   : >> { %583 = vmatprep.subr.bf16.mxu0 %v1944_v47  ;;  %624 = vmatprep.subr.bf16.mxu1 %v1954_v49 }
  0x8f   : >> { %584 = vmatpush1.bf16.msra.mxu0 %v1959_v50  ;;  %625 = vmatpush1.bf16.msra.mxu1 %v1969_v52 }
  0x90   : >> { %585 = vmatprep.subr.bf16.mxu0 %v1964_v51  ;;  %626 = vmatprep.subr.bf16.mxu1 %v1974_v53 }
  0x93   : >> { %586 = vmatpush1.bf16.msra.mxu0 %v1979_v54  ;;  %627 = vmatpush1.bf16.msra.mxu1 %v1989_v56 }
  0x94   : >> { %587 = vmatprep.subr.bf16.mxu0 %v1984_v55  ;;  %628 = vmatprep.subr.bf16.mxu1 %v1994_v57 }
  0x97   : >> { %588 = vmatpush1.bf16.msra.mxu0 %v1999_v58  ;;  %629 = vmatpush1.bf16.msra.mxu1 %v2009_v60 }
  0x98   : >> { %589 = vmatprep.subr.bf16.mxu0 %v2004_v59  ;;  %630 = vmatprep.subr.bf16.mxu1 %v2014_v61 }
  0x9b   : >> { %590 = vmatpush1.bf16.msra.mxu0 %v2019_v62  ;;  %631 = vmatpush1.bf16.msra.mxu1 %v2029_v0 }
  0x9c   : >> { %591 = vmatprep.subr.bf16.mxu0 %v2024_v63  ;;  %632 = vmatprep.subr.bf16.mxu1 %v2034_v45 }
  0x9f   : >> { %592 = vmatpush1.bf16.msra.mxu0 %v2039_v5  ;;  %633 = vmatpush1.bf16.msra.mxu1 %v2045_v6 }
  0xa0   : >> { %696 = vmatprep.subr.bf16.mxu0 %v1890_v35  ;;  %737 = vmatprep.subr.bf16.mxu1 %v1902_v38 }
 0x142   : >> { %v492_v33 = vpop.f32.mrf.mxu0  ;;  %v533_v4 = vpop.f32.mrf.mxu1 }
 0x143   : >> { %v547_v3 = vadd.f32 %v543_v7, %v492_v33  ;;  %v549_v18 = vadd.f32 %v545_v17, %v533_v4 }
 0x144   : >> { %v494_v8 = vpop.f32.mrf.mxu0  ;;  %v535_v11 = vpop.f32.mrf.mxu1 }
 0x145   : >> { %v1225_v9 = vmul.f32 -1.442695, %v547_v3  ;;  %v548_v10 = vadd.f32 %v544_v2, %v494_v8  ;;  %v1227_v20 = vmul.f32 -1.442695, %v549_v18  ;;  %v550_v21 = vadd.f32 %v546_v19, %v535_v11  ;;  %v1230_v18 = vld [vmem:[%s2091_s17 + $0x20] sm:$0xff] }
 0x146   : >> { %v496_v12 = vpop.f32.mrf.mxu0  ;;  %v537_v14 = vpop.f32.mrf.mxu1 }
 0x147   : >> { %1403 = vpow2.f32 %v1225_v9  ;;  %v1226_v13 = vmul.f32 -1.442695, %v548_v10 }
 0x148   : >> { %v497_v15 = vpop.f32.mrf.mxu0  ;;  %v538_v16 = vpop.f32.mrf.mxu1 }
 0x149   : >> { %1405 = vpow2.f32 %v1226_v13 }
 0x14a   : >> { %1407 = vpow2.f32 %v1227_v20 }
 0x14b   : >> { %1409 = vtanh.f32 %v550_v21  ;;  %v1231_v21 = vld [vmem:[%s2091_s17 + $0x28] sm:$0xff] }
 0x154   : >> { %v1404_v22 = vpop.eup %1403 }
 0x155   : >> { %v560_v23 = vadd.f32 1.0, %v1404_v22 }
 0x156   : >> { %v1406_v7 = vpop.eup %1405 }
 0x157   : >> { %1411 = vrcp.f32 %v560_v23  ;;  %v561_v2 = vadd.f32 1.0, %v1406_v7  ;;  %v1408_v3 = vpop.eup %1407 }
 0x158   : >> { %v1410_v8 = vpop.eup %1409  ;;  %v562_v12 = vadd.f32 1.0, %v1408_v3 }
 0x159   : >> { %1413 = vrcp.f32 %v561_v2 }
 0x15a   : >> { %1415 = vrcp.f32 %v562_v12  ;;  %v1233_v12 = vld [vmem:[%s2091_s17 + $0x38] sm:$0xff] }
 0x164   : >> { %v1412_v9 = vpop.eup %1411 }
 0x165   : >> { %v571_v14 = vmul.f32 %v1412_v9, %v1410_v8 }
 0x166   : >> { %v1414_v10 = vpop.eup %1413 }
 0x167   : >> { %v570_v13 = vmul.f32 %v1643_v34, %v1414_v10  ;;  %v1416_v11 = vpop.eup %1415 }
 0x169   : >> { %v2098_v4 = vadd.f32 %v571_v14, %v570_v13 }
 0x16b   : >> { %1417 = vtanh.f32 %v2098_v4 }
 0x178   : >> { %v1418_v15 = vpop.eup %1417 }
 0x179   : >> { %v574_v16 = vmul.f32 %v1418_v15, %v1416_v11 }
 0x17b   : >> { %v576_v17 = vpack.c.bf16 %v574_v16, %v574_v16 }
 0x17d   : >> { %610 = vmatmul.mubr.bf16.vlgmr.msra.gmra.mxu0 %v576_v17  ;;  %651 = vmatmul.mubr.bf16.vlgmr.msra.gmra.mxu1 %v576_v17 }
 0x17e   : >> { %697 = vmatpush1.bf16.msra.mxu0 %v1894_v36  ;;  %738 = vmatpush1.bf16.msra.mxu1 %v1907_v39 }
 0x17f   : >> { %698 = vmatprep.subr.bf16.mxu0 %v1898_v37  ;;  %739 = vmatprep.subr.bf16.mxu1 %v1911_v40 }
 0x180   : >> { %728 = vmatprep.mubr.bf16.mxu0 %v2347_v1  ;;  %769 = vmatprep.mubr.bf16.mxu1 %v2347_v1 }
 0x182   : >> { %699 = vmatpush1.bf16.msra.mxu0 %v1916_v41  ;;  %740 = vmatpush1.bf16.msra.mxu1 %v1927_v43 }
 0x183   : >> { %700 = vmatprep.subr.bf16.mxu0 %v1922_v42  ;;  %741 = vmatprep.subr.bf16.mxu1 %v1932_v44 }
 0x186   : >> { %701 = vmatpush1.bf16.msra.mxu0 %v1938_v46  ;;  %742 = vmatpush1.bf16.msra.mxu1 %v1949_v48 }
 0x187   : >> { %702 = vmatprep.subr.bf16.mxu0 %v1944_v47  ;;  %743 = vmatprep.subr.bf16.mxu1 %v1954_v49 }
 0x18a   : >> { %703 = vmatpush1.bf16.msra.mxu0 %v1959_v50  ;;  %744 = vmatpush1.bf16.msra.mxu1 %v1969_v52 }
 0x18b   : >> { %704 = vmatprep.subr.bf16.mxu0 %v1964_v51  ;;  %745 = vmatprep.subr.bf16.mxu1 %v1974_v53 }
 0x18e   : >> { %705 = vmatpush1.bf16.msra.mxu0 %v1979_v54  ;;  %746 = vmatpush1.bf16.msra.mxu1 %v1989_v56 }
 0x18f   : >> { %706 = vmatprep.subr.bf16.mxu0 %v1984_v55  ;;  %747 = vmatprep.subr.bf16.mxu1 %v1994_v57 }
 0x192   : >> { %707 = vmatpush1.bf16.msra.mxu0 %v1999_v58  ;;  %748 = vmatpush1.bf16.msra.mxu1 %v2009_v60 }
 0x193   : >> { %708 = vmatprep.subr.bf16.mxu0 %v2004_v59  ;;  %749 = vmatprep.subr.bf16.mxu1 %v2014_v61 }
 0x196   : >> { %709 = vmatpush1.bf16.msra.mxu0 %v2019_v62  ;;  %750 = vmatpush1.bf16.msra.mxu1 %v2029_v0 }
 0x197   : >> { %710 = vmatprep.subr.bf16.mxu0 %v2024_v63  ;;  %751 = vmatprep.subr.bf16.mxu1 %v2034_v45 }
 0x19a   : >> { %711 = vmatpush1.bf16.msra.mxu0 %v2039_v5  ;;  %752 = vmatpush1.bf16.msra.mxu1 %v2045_v6 }
 0x19b   : >> { %815 = vmatprep.subr.bf16.mxu0 %v1890_v35  ;;  %856 = vmatprep.subr.bf16.mxu1 %v1902_v38  ;;  %v1232_v35 = vld [vmem:[%s2091_s17 + $0x30] sm:$0xff] }
 0x23d   : >> { %v611_v19 = vpop.f32.mrf.mxu0  ;;  %v652_v20 = vpop.f32.mrf.mxu1 }
 0x23e   : >> { %v666_v22 = vadd.f32 %v1230_v18, %v611_v19  ;;  %v668_v38 = vadd.f32 %v1232_v35, %v652_v20 }
 0x23f   : >> { %v613_v23 = vpop.f32.mrf.mxu0  ;;  %v654_v34 = vpop.f32.mrf.mxu1 }
 0x240   : >> { %v1234_v33 = vmul.f32 -1.442695, %v666_v22  ;;  %v667_v7 = vadd.f32 %v1231_v21, %v613_v23  ;;  %v1236_v13 = vmul.f32 -1.442695, %v668_v38  ;;  %v669_v11 = vadd.f32 %v1233_v12, %v654_v34  ;;  %v1248_v38 = vld [vmem:[%s2091_s17 + $0x60] sm:$0xff] }
 0x241   : >> { %v615_v2 = vpop.f32.mrf.mxu0  ;;  %v656_v3 = vpop.f32.mrf.mxu1 }
 0x242   : >> { %1419 = vpow2.f32 %v1234_v33  ;;  %v1235_v8 = vmul.f32 -1.442695, %v667_v7 }
 0x243   : >> { %v616_v9 = vpop.f32.mrf.mxu0  ;;  %v657_v10 = vpop.f32.mrf.mxu1 }
 0x244   : >> { %1421 = vpow2.f32 %v1235_v8 }
 0x245   : >> { %1423 = vpow2.f32 %v1236_v13 }
 0x24f   : >> { %v1420_v14 = vpop.eup %1419 }
 0x250   : >> { %v679_v15 = vadd.f32 1.0, %v1420_v14  ;;  %v1249_v14 = vld [vmem:[%s2091_s17 + $0x68] sm:$0xff] }
 0x251   : >> { %v1422_v16 = vpop.eup %1421 }
 0x252   : >> { %1425 = vrcp.f32 %v679_v15  ;;  %v680_v17 = vadd.f32 1.0, %v1422_v16  ;;  %v1424_v18 = vpop.eup %1423 }
 0x253   : >> { %1427 = vtanh.f32 %v669_v11  ;;  %v681_v23 = vadd.f32 1.0, %v1424_v18 }
 0x254   : >> { %1429 = vrcp.f32 %v680_v17 }
 0x255   : >> { %1431 = vrcp.f32 %v681_v23 }
 0x25f   : >> { %v1426_v19 = vpop.eup %1425 }
 0x260   : >> { %v1428_v21 = vpop.eup %1427 }
 0x261   : >> { %v1430_v22 = vpop.eup %1429  ;;  %v690_v7 = vmul.f32 %v1428_v21, %v1426_v19 }
 0x262   : >> { %v689_v33 = vmul.f32 %v1430_v22, %v2098_v4  ;;  %v1432_v34 = vpop.eup %1431 }
 0x264   : >> { %v2140_v20 = vadd.f32 %v690_v7, %v689_v33  ;;  %v1250_v7 = vld [vmem:[%s2091_s17 + $0x70] sm:$0xff] }
 0x266   : >> { %1433 = vtanh.f32 %v2140_v20 }
 0x273   : >> { %v1434_v2 = vpop.eup %1433 }
 0x274   : >> { %v693_v3 = vmul.f32 %v1434_v2, %v1432_v34  ;;  %v1251_v34 = vld [vmem:[%s2091_s17 + $0x78] sm:$0xff] }
 0x276   : >> { %v695_v8 = vpack.c.bf16 %v693_v3, %v693_v3 }
 0x278   : >> { %729 = vmatmul.mubr.bf16.vlgmr.msra.gmra.mxu0 %v695_v8  ;;  %770 = vmatmul.mubr.bf16.vlgmr.msra.gmra.mxu1 %v695_v8 }
 0x279   : >> { %816 = vmatpush1.bf16.msra.mxu0 %v1894_v36  ;;  %857 = vmatpush1.bf16.msra.mxu1 %v1907_v39  ;;  %v1240_v39 = vld [vmem:[%s2091_s17 + $0x48] sm:$0xff] }
 0x27a   : >> { %817 = vmatprep.subr.bf16.mxu0 %v1898_v37  ;;  %858 = vmatprep.subr.bf16.mxu1 %v1911_v40 }
 0x27b   : >> { %847 = vmatprep.mubr.bf16.mxu0 %v2347_v1  ;;  %888 = vmatprep.mubr.bf16.mxu1 %v2347_v1  ;;  %v1239_v1 = vld [vmem:[%s2091_s17 + $0x40] sm:$0xff] }
 0x27d   : >> { %818 = vmatpush1.bf16.msra.mxu0 %v1916_v41  ;;  %859 = vmatpush1.bf16.msra.mxu1 %v1927_v43 }
 0x27e   : >> { %819 = vmatprep.subr.bf16.mxu0 %v1922_v42  ;;  %860 = vmatprep.subr.bf16.mxu1 %v1932_v44 }
 0x281   : >> { %820 = vmatpush1.bf16.msra.mxu0 %v1938_v46  ;;  %861 = vmatpush1.bf16.msra.mxu1 %v1949_v48 }
 0x282   : >> { %821 = vmatprep.subr.bf16.mxu0 %v1944_v47  ;;  %862 = vmatprep.subr.bf16.mxu1 %v1954_v49 }
 0x285   : >> { %822 = vmatpush1.bf16.msra.mxu0 %v1959_v50  ;;  %863 = vmatpush1.bf16.msra.mxu1 %v1969_v52  ;;  %v1242_v50 = vld [vmem:[%s2091_s17 + $0x58] sm:$0xff] }
 0x286   : >> { %823 = vmatprep.subr.bf16.mxu0 %v1964_v51  ;;  %864 = vmatprep.subr.bf16.mxu1 %v1974_v53 }
 0x289   : >> { %824 = vmatpush1.bf16.msra.mxu0 %v1979_v54  ;;  %865 = vmatpush1.bf16.msra.mxu1 %v1989_v56 }
 0x28a   : >> { %825 = vmatprep.subr.bf16.mxu0 %v1984_v55  ;;  %866 = vmatprep.subr.bf16.mxu1 %v1994_v57 }
 0x28d   : >> { %826 = vmatpush1.bf16.msra.mxu0 %v1999_v58  ;;  %867 = vmatpush1.bf16.msra.mxu1 %v2009_v60 }
 0x28e   : >> { %827 = vmatprep.subr.bf16.mxu0 %v2004_v59  ;;  %868 = vmatprep.subr.bf16.mxu1 %v2014_v61 }
 0x291   : >> { %828 = vmatpush1.bf16.msra.mxu0 %v2019_v62  ;;  %869 = vmatpush1.bf16.msra.mxu1 %v2029_v0 }
 0x292   : >> { %829 = vmatprep.subr.bf16.mxu0 %v2024_v63  ;;  %870 = vmatprep.subr.bf16.mxu1 %v2034_v45 }
 0x295   : >> { %830 = vmatpush1.bf16.msra.mxu0 %v2039_v5  ;;  %871 = vmatpush1.bf16.msra.mxu1 %v2045_v6  ;;  %v1241_v5 = vld [vmem:[%s2091_s17 + $0x50] sm:$0xff] }
 0x338   : >> { %v730_v36 = vpop.f32.mrf.mxu0  ;;  %v771_v37 = vpop.f32.mrf.mxu1 }
 0x339   : >> { %v785_v40 = vadd.f32 %v1239_v1, %v730_v36  ;;  %v787_v6 = vadd.f32 %v1241_v5, %v771_v37 }
 0x33a   : >> { %v732_v41 = vpop.f32.mrf.mxu0  ;;  %v773_v42 = vpop.f32.mrf.mxu1 }
 0x33b   : >> { %v1243_v43 = vmul.f32 -1.442695, %v785_v40  ;;  %v786_v44 = vadd.f32 %v1240_v39, %v732_v41  ;;  %v1245_v51 = vmul.f32 -1.442695, %v787_v6  ;;  %v788_v53 = vadd.f32 %v1242_v50, %v773_v42 }
 0x33c   : >> { %v734_v46 = vpop.f32.mrf.mxu0  ;;  %v775_v47 = vpop.f32.mrf.mxu1 }
 0x33d   : >> { %1435 = vpow2.f32 %v1243_v43  ;;  %v1244_v48 = vmul.f32 -1.442695, %v786_v44 }
 0x33e   : >> { %v735_v45 = vpop.f32.mrf.mxu0  ;;  %v776_v49 = vpop.f32.mrf.mxu1 }
 0x33f   : >> { %1437 = vpow2.f32 %v1244_v48 }
 0x340   : >> { %1439 = vpow2.f32 %v1245_v51 }
 0x34a   : >> { %v1436_v52 = vpop.eup %1435 }
 0x34b   : >> { %v798_v54 = vadd.f32 1.0, %v1436_v52 }
 0x34c   : >> { %v1438_v55 = vpop.eup %1437 }
 0x34d   : >> { %1441 = vrcp.f32 %v798_v54  ;;  %v799_v56 = vadd.f32 1.0, %v1438_v55  ;;  %v1440_v57 = vpop.eup %1439 }
 0x34e   : >> { %1443 = vtanh.f32 %v788_v53  ;;  %v800_v61 = vadd.f32 1.0, %v1440_v57 }
 0x34f   : >> { %1445 = vrcp.f32 %v799_v56 }
 0x350   : >> { %1447 = vrcp.f32 %v800_v61 }
 0x35a   : >> { %v1442_v58 = vpop.eup %1441 }
 0x35b   : >> { %v1444_v59 = vpop.eup %1443 }
 0x35c   : >> { %v1446_v60 = vpop.eup %1445  ;;  %v809_v63 = vmul.f32 %v1444_v59, %v1442_v58 }
 0x35d   : >> { %v808_v62 = vmul.f32 %v1446_v60, %v2140_v20  ;;  %v1448_v4 = vpop.eup %1447 }
 0x35f   : >> { %v810_v0 = vadd.f32 %v809_v63, %v808_v62 }
 0x361   : >> { %1449 = vtanh.f32 %v810_v0 }
 0x36e   : >> { %v1450_v9 = vpop.eup %1449 }
 0x36f   : >> { %v812_v10 = vmul.f32 %v1450_v9, %v1448_v4 }
 0x371   : >> { %v814_v35 = vpack.c.bf16 %v812_v10, %v812_v10 }
 0x373   : >> { %848 = vmatmul.mubr.bf16.vlgmr.msra.gmra.mxu0 %v814_v35  ;;  %889 = vmatmul.mubr.bf16.vlgmr.msra.gmra.mxu1 %v814_v35 }
 0x433   : >> { %v849_v12 = vpop.f32.mrf.mxu0  ;;  %v890_v13 = vpop.f32.mrf.mxu1 }
 0x434   : >> { %v904_v11 = vadd.f32 %v1248_v38, %v849_v12  ;;  %v906_v20 = vadd.f32 %v1250_v7, %v890_v13 }
 0x435   : >> { %v851_v15 = vpop.f32.mrf.mxu0  ;;  %v892_v16 = vpop.f32.mrf.mxu1 }
 0x436   : >> { %v1252_v17 = vmul.f32 -1.442695, %v904_v11  ;;  %v905_v18 = vadd.f32 %v1249_v14, %v851_v15  ;;  %v1254_v2 = vmul.f32 -1.442695, %v906_v20  ;;  %v907_v8 = vadd.f32 %v1251_v34, %v892_v16 }
 0x437   : >> { %v853_v19 = vpop.f32.mrf.mxu0  ;;  %v894_v21 = vpop.f32.mrf.mxu1 }
 0x438   : >> { %1451 = vpow2.f32 %v1252_v17  ;;  %v1253_v22 = vmul.f32 -1.442695, %v905_v18 }
 0x439   : >> { %v854_v23 = vpop.f32.mrf.mxu0  ;;  %v895_v33 = vpop.f32.mrf.mxu1 }
 0x43a   : >> { %1453 = vpow2.f32 %v1253_v22 }
 0x43b   : >> { %1455 = vpow2.f32 %v1254_v2 }
 0x445   : >> { %v1452_v3 = vpop.eup %1451 }
 0x446   : >> { %v917_v1 = vadd.f32 1.0, %v1452_v3 }
 0x447   : >> { %v1454_v36 = vpop.eup %1453 }
 0x448   : >> { %1457 = vrcp.f32 %v917_v1  ;;  %v918_v37 = vadd.f32 1.0, %v1454_v36  ;;  %v1456_v39 = vpop.eup %1455 }
 0x449   : >> { %1459 = vtanh.f32 %v907_v8  ;;  %v919_v43 = vadd.f32 1.0, %v1456_v39 }
 0x44a   : >> { %1461 = vrcp.f32 %v918_v37 }
 0x44b   : >> { %1463 = vrcp.f32 %v919_v43 }
 0x455   : >> { %v1458_v40 = vpop.eup %1457 }
 0x456   : >> { %v1460_v41 = vpop.eup %1459 }
 0x457   : >> { %v1462_v42 = vpop.eup %1461  ;;  %v928_v46 = vmul.f32 %v1460_v41, %v1458_v40 }
 0x458   : >> { %v927_v44 = vmul.f32 %v1462_v42, %v810_v0  ;;  %v1464_v48 = vpop.eup %1463 }
 0x45a   : >> { %v929_v47 = vadd.f32 %v928_v46, %v927_v44  }
 0x45c   : >> { %1465 = vtanh.f32 %v929_v47  ;;  %v2348_v34 = vmov %v929_v47  ;;  %933 = vst [vmem:[#allocation3] sm:$0xff] (%p290_p8), %v929_v47 }
 0x468   : > { %292 = sbr.rel (!%p290_p8) target bundleno = 96 (0x60), region = 104 }
 0x469   : >> { %v1466_v45 = vpop.eup %1465 }
 0x46a   : >> { %v931_v49 = vmul.f32 %v1466_v45, %v1464_v48  }
 0x46c   : >> { %v2349_v33 = vmov %v931_v49  ;;  %932 = vst [vmem:[#allocation2] sm:$0xff] (%p290_p8), %v931_v49 }
 0x46d   : > { %937 = sbr.rel (%p1255_p3) target bundleno = 1679 (0x68f), region = 59 }
 0x472   : > { %v1467_v5 = vld [vmem:[%s2260_s2 + $0x38] sm:$0xff]   ;;  %1063 = vst [vmem:[#allocation10] sm:$0xff] %v931_v49  ;;  %v1661_v6 = vmov 0.0   ;;  %v1468_v50 = vld [vmem:[%s2260_s2 + $0x30] sm:$0xff]   ;;  %vm1662_vm0 = vmmov 0   ;;  %v1469_v24 = vld [vmem:[%s2260_s2 + $0x28] sm:$0xff]   ;;  %v938_v30 = vpack.c.bf16 %v931_v49, %v931_v49 }
 0x473   : > { %1287 = vmatprep.subr.bf16.mxu0 %v1661_v6  ;;  %1303 = vmatprep.mubr.msk.bf16.mxu0 %vm1662_vm0, %v1661_v6  ;;  %v1470_v25 = vld [vmem:[%s2260_s2 + $0x20] sm:$0xff]   ;;  %v1471_v26 = vld [vmem:[%s2260_s2 + $0x18] sm:$0xff]   ;;  %v1472_v27 = vld [vmem:[%s2260_s2 + $0x10] sm:$0xff]   ;;  %vm1050_vm1 = vcmask 64512  }
 0x474   : > { %1288 = vmatpush3.bf16.msra.mxu0 %v1467_v5  ;;  %v1473_v28 = vld [vmem:[%s2260_s2 + $0x8] sm:$0xff]   ;;  %v1474_v29 = vld [vmem:[%s2260_s2] sm:$0xff]  }
 0x475   : > { %1289 = vmatprep.subr.bf16.mxu0 %v1661_v6  ;;  %v1256_v31 = vld [vmem:[%s2261_s3] ss:$0 sm:$0xff] }
 0x478   : > { %1290 = vmatpush3.bf16.msra.mxu0 %v1468_v50 }
 0x479   : > { %1291 = vmatprep.subr.bf16.mxu0 %v1661_v6 }
 0x47c   : > { %1292 = vmatpush3.bf16.msra.mxu0 %v1469_v24 }
 0x47d   : > { %1293 = vmatprep.subr.bf16.mxu0 %v1661_v6 }
 0x480   : > { %1294 = vmatpush3.bf16.msra.mxu0 %v1470_v25 }
 0x481   : > { %1295 = vmatprep.subr.bf16.mxu0 %v1661_v6 }
 0x484   : > { %1296 = vmatpush3.bf16.msra.mxu0 %v1471_v26 }
 0x485   : > { %1297 = vmatprep.subr.bf16.mxu0 %v1661_v6 }
 0x488   : > { %1298 = vmatpush3.bf16.msra.mxu0 %v1472_v27 }
 0x489   : > { %1299 = vmatprep.subr.bf16.mxu0 %v1661_v6 }
 0x48c   : > { %1300 = vmatpush3.bf16.msra.mxu0 %v1473_v28 }
 0x48d   : > { %1301 = vmatprep.subr.bf16.mxu0 %v1661_v6 }
 0x490   : > { %1302 = vmatpush3.bf16.msra.mxu0 %v1474_v29 }
 0x493   : > { %1304 = vmatmul.mubr.bf16.vlgmr.msra.gmra.mxu0 %v938_v30 }
 0x553   : > { %v1044_v32 = vpop.f32.mrf.mxu0 }
 0x554   : > { %v1045_v51 = vadd.f32 %v1256_v31, %v1044_v32 }
 0x555   : > { %v1305_v52 = vpop.f32.mrf.mxu0 }
 0x556   : > { %v1051_v53 = vsel %vm1050_vm1, %v1045_v51, -inf }
 0x557   : > { %1052 = vmax.xlane.f32.xlu0 %v1051_v53  ;;  %v1047_v54 = vpop.f32.mrf.mxu0 }
 0x559   : > { %v1306_v55 = vpop.f32.mrf.mxu0 }
 0x5e0   : > { %v1053_v56 = vpop.xlane.xlu0 %1052 }
 0x5e1   : > { %v1054_v57 = vsub.f32 %v1045_v51, %v1053_v56 }
 0x5e3   : > { %v1055_v58 = vmul.f32 1.442695, %v1054_v57 }
 0x5e5   : > { %1475 = vpow2.f32 %v1055_v58 }
 0x5f2   : > { %v1476_v59 = vpop.eup %1475 }
 0x5f3   : > { %v1057_v60 = vsel %vm1050_vm1, %v1476_v59, 0.0 }
 0x5f4   : > { %1058 = vadd.xlane.f32.xlu0 %v1057_v60 }
 0x67d   : > { %v1059_v61 = vpop.xlane.xlu0 %1058 }
 0x67e   : > { %1477 = vrcp.f32 %v1059_v61 }
 0x68b   : > { %v1478_v62 = vpop.eup %1477 }
 0x68c   : > { %v1061_v63 = vmul.f32 %v1478_v62, %v1476_v59 }
 0x68e   : > { %1062 = vst.msk [vmem:[#allocation9] sm:$0xff] %vm1050_vm1, %v1061_v63 }
 0x68f PF: > { %p1332_p7 = scmp.eq.s32.totalorder %s1714_s22, 3  ;;  %s1663_s24 = smov [#allocation9]  }
 0x690   : > { %s1071_s17 = sshll.u32 %s1663_s24, 4  ;;  %s1664_s25 = smov [#allocation10]   ;;  %s1072_s17 = int_to_ptr.vmem [resolvable:$true] %s1071_s17 }
 0x691   : > { %s1082_s26 = sshll.u32 %s1664_s25, 4  ;;  %s1533_s27 = scalar_lea.vmem %s1072_s17, 128  ;;  %s1083_s26 = int_to_ptr.vmem [resolvable:$true] %s1082_s26 }
 0x692   : > { %p1534_p9 = scmp.ne.s32.totalorder %s1072_s17, %s1533_s27  ;;  %p1540_p12 = scmp.lt.s32.totalorder %s1072_s17, %s1072_s17 }
 0x693   : > { %p1541_p13 = scmp.lt.s32.totalorder %s1533_s27, %s1533_s27 }
 0x694   : > { %p1535_p10 = pnand %p1534_p9, %p1332_p7 }
 0x695   : > { %p1542_p2 = por %p1541_p13, %p1540_p12 }
 0x696   : > { %p1536_p11 = pneg %p1535_p10 }
 0x698   : > { %p1543_p0 = pnand %p1542_p2, %p1536_p11 }
 0x69a   : > { %1546 = shalt.err (!%p1543_p0)
}
 0x69b   : > { %1314 = dma.vmem_to_hbm [thread:$0]  (%p1332_p7), %s1072_s17, 128, %s2262_s4, [#allocation6]  }
 0x69c   : > { %s1557_s7 = scalar_lea.vmem %s1083_s26, 128  ;;  %p1564_p6 = scmp.lt.s32.totalorder %s1083_s26, %s1083_s26 }
 0x69d   : > { %p1558_p1 = scmp.ne.s32.totalorder %s1083_s26, %s1557_s7  ;;  %p1565_p8 = scmp.lt.s32.totalorder %s1557_s7, %s1557_s7 }
 0x69f   : > { %p1559_p4 = pnand %p1558_p1, %p1332_p7  ;;  %p1566_p3 = por %p1565_p8, %p1564_p6 }
 0x6a1   : > { %p1560_p5 = pneg %p1559_p4 }
 0x6a3   : > { %p1567_p9 = pnand %p1566_p3, %p1560_p5 }
 0x6a5   : > { %1570 = shalt.err (!%p1567_p9)
}
 0x6a6   : > { %1316 = dma.vmem_to_hbm [thread:$0]  (%p1332_p7), %s1083_s26, 128, %s2263_s5, [#allocation11]  }
 0x6a7   : > { %1618 = dma.done.wait (%p1332_p7), [#allocation6], 128  }
 0x6a8   : > { %1620 = vsyncadd (%p1332_p7), [#allocation6], 4294967168 }
 0x6a9   : > { %1622 = dma.done.wait (%p1332_p7), [#allocation11], 128  }
 0x6aa   : > { %1624 = vsyncadd (%p1332_p7), [#allocation11], 4294967168 }
 0x6ab PF: > { %p19_p10 = scmp.ge.s32.totalorder %s1740_s28, 6   ;;  %s2350_s18 = smov %s1631_s19 }
 0x6ac   : > { %s2351_s19 = smov %s1635_s20  ;;  %s2352_s20 = smov %s1757_s11 }
 0x6ad   : > { %s2353_s21 = smov %s1740_s28  ;;  %21 = sbr.rel (!%p19_p10) target bundleno = 6 (0x6), region = 115 }
 0x6b2   :  { %1099 = vsyncpa [#allocation5], 1 }
 0x6b3   :  { %1101 = vsyncpa [#allocation5 + $0x1], 1 }
 0x6b4   :  { %1102 = vsyncpa [#allocation8], 1 }
 0x6b5   :  { %1103 = vsyncpa [#allocation6], 1 }
 0x6b6   :  { %1105 = vsyncpa [#allocation6 + $0x1], 1 }
 0x6b7   :  { %1106 = vsyncpa [#allocation11], 1 }

</bundles_post_ra>
